<compile_context>
chip_gen: v7x
topology: tpu7x:2x2x1
jax: 0.10.0
libtpu: 0.0.40
codegen_flags: <defaults>
</compile_context>

<pallas_src>
import jax
import jax.numpy as jnp
from jax.experimental import pallas as pl
from jax.experimental.pallas import tpu as pltpu

_BF16 = jnp.bfloat16
_F32 = jnp.float32
_LANES = 128


def _default_vmem_limit():
    # Generation-aware scoped-VMEM budget (v7x 64 MiB physical, v5e/v6e 128).
    try:
        cap = int(pltpu.get_tpu_info().vmem_capacity_bytes)
    except Exception:
        cap = 64 * 1024 * 1024
    return min((cap * 3) // 4, 96 * 1024 * 1024)


_VMEM_LIMIT = _default_vmem_limit()


def _vmem():
    return pl.BlockSpec(memory_space=pltpu.MemorySpace.VMEM)


def _cparams(dims=None):
    if dims is None:
        return pltpu.CompilerParams(vmem_limit_bytes=_VMEM_LIMIT)
    return pltpu.CompilerParams(dimension_semantics=dims,
                                vmem_limit_bytes=_VMEM_LIMIT)


# ------------------------- in-kernel math helpers (f32) ----------------------

def _bn(x, gamma, beta, eps=1e-5):
    # BatchNorm1d, training mode; one-pass biased batch statistics over axis 0.
    mean = jnp.mean(x, axis=0, keepdims=True)
    msq = jnp.mean(x * x, axis=0, keepdims=True)
    var = msq - mean * mean
    return (x - mean) * jax.lax.rsqrt(var + eps) * gamma + beta


def _softmax(x, log=False):
    m = jnp.max(x, axis=-1, keepdims=True)
    e = jnp.exp(x - m)
    s = jnp.sum(e, axis=-1, keepdims=True)
    if log:
        return (x - m) - jnp.log(s)
    return e / s


# --------------- K1: feature reducer + BN (BERT-axis reduction grid) ---------

def _reduce_bn_kernel(x_ref, w_ref, b_ref, g_ref, be_ref, o_ref, acc_ref):
    k = pl.program_id(0)

    @pl.when(k == 0)
    def _():
        acc_ref[...] = jnp.zeros_like(acc_ref)

    acc_ref[...] += jnp.dot(x_ref[...], w_ref[...], preferred_element_type=_F32)

    @pl.when(k == pl.num_programs(0) - 1)
    def _():
        y = acc_ref[...] + b_ref[...]
        o_ref[...] = _bn(y, g_ref[...], be_ref[...]).astype(o_ref.dtype)


def reduce_and_bn(features, w, b, gamma, beta):
    N, bert = features.shape
    R = w.shape[1]
    tk = 128 if bert % 128 == 0 else bert
    return pl.pallas_call(
        _reduce_bn_kernel,
        out_shape=jax.ShapeDtypeStruct((N, R), _BF16),
        grid=(bert // tk,),
        in_specs=[
            pl.BlockSpec((N, tk), lambda k: (0, k)),
            pl.BlockSpec((tk, R), lambda k: (k, 0)),
            pl.BlockSpec((1, R), lambda k: (0, 0)),
            pl.BlockSpec((1, R), lambda k: (0, 0)),
            pl.BlockSpec((1, R), lambda k: (0, 0)),
        ],
        out_specs=pl.BlockSpec((N, R), lambda k: (0, 0)),
        scratch_shapes=[pltpu.VMEM((N, R), _F32)],
        compiler_params=_cparams(("arbitrary",)),
    )(features, w, b, gamma, beta)


# ------ K2: RelGraphConv; grid = (row tiles "parallel", relations "arbitrary")

def _row_tile(n):
    if n <= 512:
        return n
    for t in (512, 256, 128):
        if n % t == 0:
            return t
    return n


def _relgraph_kernel(hf_ref, hr_ref, adj_ref, wr_ref, wl_ref, b_ref,
                     o_ref, acc_ref):
    r = pl.program_id(1)

    @pl.when(r == 0)
    def _():
        acc_ref[...] = (jnp.dot(hr_ref[...], wl_ref[...],
                                preferred_element_type=_F32) + b_ref[...])

    # TODO(synk): when N//tn > 1, hoist h @ W_r into a shared projection slab
    # (or stack relation weights into (R, n_rels*H)) to avoid recompute.
    xr = jnp.dot(hf_ref[...], wr_ref[...], preferred_element_type=_F32)
    acc_ref[...] += jnp.dot(adj_ref[...], xr.astype(_BF16),
                            preferred_element_type=_F32)

    @pl.when(r == pl.num_programs(1) - 1)
    def _():
        o_ref[...] = jnp.maximum(acc_ref[...], 0.0).astype(o_ref.dtype)


def relgraphconv(h, adj_rel, w_rel, w_loop, bias):
    n_rels, N, _ = adj_rel.shape
    R = h.shape[1]
    H = w_loop.shape[1]
    tn = _row_tile(N)
    adj_map = lambda i, r: (r, i, 0)
    try:
        adj_spec = pl.BlockSpec((None, tn, N), adj_map,
                                pipeline_mode=pl.Buffered(3))
    except Exception:  # older jax without pipeline_mode / Buffered
        adj_spec = pl.BlockSpec((None, tn, N), adj_map)
    return pl.pallas_call(
        _relgraph_kernel,
        out_shape=jax.ShapeDtypeStruct((N, H), _BF16),
        grid=(N // tn, n_rels),
        in_specs=[
            pl.BlockSpec((N, R), lambda i, r: (0, 0)),         # h, resident
            pl.BlockSpec((tn, R), lambda i, r: (i, 0)),         # h row tile
            adj_spec,                                           # adjacency slab
            pl.BlockSpec((None, R, H), lambda i, r: (r, 0, 0)),  # W_r
            pl.BlockSpec((R, H), lambda i, r: (0, 0)),          # W_loop
            pl.BlockSpec((1, H), lambda i, r: (0, 0)),          # bias
        ],
        out_specs=pl.BlockSpec((tn, H), lambda i, r: (i, 0)),
        scratch_shapes=[pltpu.VMEM((tn, H), _F32)],
        compiler_params=_cparams(("parallel", "arbitrary")),
    )(h, h, adj_rel, w_rel, w_loop, bias)


# ---- K3: ALL conv layers fused: grid=(L,), x carried in VMEM, adj resident --

def _conv_stack_kernel(x0_ref, adj_ref, g_ref, be_ref, w_ref, b_ref,
                       o_ref, x_sc):
    l = pl.program_id(0)

    @pl.when(l == 0)
    def _():
        x_sc[...] = x0_ref[...].astype(_F32)

    # TODO(synk): CustomGraphConvDGL exact semantics unknown; assumed mean
    # aggregation over in-neighbors (adjacency is pre-normalized in JAX).
    xn = _bn(x_sc[...], g_ref[...], be_ref[...])
    agg = jnp.dot(adj_ref[...], xn.astype(_BF16), preferred_element_type=_F32)
    y = jnp.dot(agg.astype(_BF16), w_ref[...],
                preferred_element_type=_F32) + b_ref[...]
    x_sc[...] = jnp.maximum(y, 0.0)

    @pl.when(l == pl.num_programs(0) - 1)
    def _():
        o_ref[...] = x_sc[...].astype(o_ref.dtype)


def conv_stack(x, adj_norm, gammas, betas, ws, bs):
    L = ws.shape[0]
    N, H = x.shape
    return pl.pallas_call(
        _conv_stack_kernel,
        out_shape=jax.ShapeDtypeStruct((N, H), _BF16),
        grid=(L,),
        in_specs=[
            pl.BlockSpec((N, H), lambda l: (0, 0)),             # x0, resident
            pl.BlockSpec((N, N), lambda l: (0, 0)),             # adj, resident
            pl.BlockSpec((None, 1, H), lambda l: (l, 0, 0)),    # gamma[l]
            pl.BlockSpec((None, 1, H), lambda l: (l, 0, 0)),    # beta[l]
            pl.BlockSpec((None, H, H), lambda l: (l, 0, 0)),    # W[l]
            pl.BlockSpec((None, 1, H), lambda l: (l, 0, 0)),    # b[l]
        ],
        out_specs=pl.BlockSpec((N, H), lambda l: (0, 0)),
        scratch_shapes=[pltpu.VMEM((N, H), _F32)],
        compiler_params=_cparams(("arbitrary",)),
    )(x, adj_norm, gammas, betas, ws, bs)


# -- K4: packed attention projections (lane-dense) + node scaling, one matmul -

def _attention_kernel(x_ref, wpk_ref, bpk_ref, xc_ref, xs_ref, proj_ref):
    x = x_ref[...]
    proj = jnp.dot(x, wpk_ref[...], preferred_element_type=_F32) + bpk_ref[...]
    a0 = proj[:, 0:1]
    a1 = proj[:, 1:2]
    m = jnp.maximum(a0, a1)
    e0 = jnp.exp(a0 - m)
    e1 = jnp.exp(a1 - m)
    inv = 1.0 / (e0 + e1)
    xf = x.astype(_F32)
    xc_ref[...] = (xf * (e0 * inv)).astype(xc_ref.dtype)
    xs_ref[...] = (xf * (e1 * inv)).astype(xs_ref.dtype)
    proj_ref[...] = proj   # lanes 0:2 node-att logits, 2:4 src proj, 4:6 dst proj


def attention_block(x, w_packed, b_packed):
    N, H = x.shape
    return pl.pallas_call(
        _attention_kernel,
        out_shape=(jax.ShapeDtypeStruct((N, H), _BF16),
                   jax.ShapeDtypeStruct((N, H), _BF16),
                   jax.ShapeDtypeStruct((N, _LANES), _F32)),
        in_specs=[_vmem()] * 3,
        out_specs=(_vmem(), _vmem(), _vmem()),
        compiler_params=_cparams(),
    )(x, w_packed, b_packed)


# ----- K5: BN -> weighted conv (pre-normalized adj) -> ReLU -> mean-nodes ----

def _bn_graphconv_mean_kernel(x_ref, g_ref, be_ref, adjn_ref, w_ref, b_ref,
                              mem_ref, o_ref):
    xn = _bn(x_ref[...].astype(_F32), g_ref[...], be_ref[...])
    agg = jnp.dot(adjn_ref[...], xn.astype(_BF16), preferred_element_type=_F32)
    y = jnp.maximum(jnp.dot(agg.astype(_BF16), w_ref[...],
                            preferred_element_type=_F32) + b_ref[...], 0.0)
    o_ref[...] = jnp.dot(mem_ref[...], y.astype(_BF16),
                         preferred_element_type=_F32)


def bn_graphconv_mean(x, gamma, beta, adj_norm, w, b, member):
    G = member.shape[0]
    H = w.shape[1]
    return pl.pallas_call(
        _bn_graphconv_mean_kernel,
        out_shape=jax.ShapeDtypeStruct((G, H), _F32),
        in_specs=[_vmem()] * 7,
        out_specs=_vmem(),
        compiler_params=_cparams(),
    )(x, gamma, beta, adj_norm, w, b, member)


# ---- K6: ALL THREE readout heads fused, lane-dense (padded-class) outputs ---

def _readout3_kernel(xc_ref, xs_ref, xt_ref,
                     cg1, cb1, cw1, cwb1, cg2, cb2, cw2, cwb2,
                     sg1, sb1, sw1, swb1, sg2, sb2, sw2, swb2,
                     tg1, tb1, tw1, twb1, tg2, tb2, tw2, twb2,
                     oc_ref, os_ref, ot_ref):
    # TODO(synk): dense_size=32 leaves MXU output columns idle on v6e/v7x;
    # could be zero-padded to 128 like the class dim if it ever matters.
    def head(x, g1, b1, w1, wb1, g2, b2, w2, wb2, log):
        h = _bn(x, g1[...], b1[...])
        h = jnp.maximum(jnp.dot(h.astype(_BF16), w1[...],
                                preferred_element_type=_F32) + wb1[...], 0.0)
        h = _bn(h, g2[...], b2[...])
        logits = (jnp.dot(h.astype(_BF16), w2[...],
                          preferred_element_type=_F32) + wb2[...])
        return _softmax(logits, log=log)

    oc_ref[...] = head(xc_ref[...].astype(_F32),
                       cg1, cb1, cw1, cwb1, cg2, cb2, cw2, cwb2, False)
    os_ref[...] = head(xs_ref[...].astype(_F32),
                       sg1, sb1, sw1, swb1, sg2, sb2, sw2, swb2, True)
    ot_ref[...] = head(xt_ref[...].astype(_F32),
                       tg1, tb1, tw1, twb1, tg2, tb2, tw2, twb2, False)


def readout_heads(xc, xs, xcat, causal_p, spurious_p, concat_p):
    G = xc.shape[0]
    args = (xc, xs, xcat) + causal_p + spurious_p + concat_p
    return pl.pallas_call(
        _readout3_kernel,
        out_shape=(jax.ShapeDtypeStruct((G, _LANES), _F32),) * 3,
        in_specs=[_vmem()] * len(args),
        out_specs=(_vmem(),) * 3,
        compiler_params=_cparams(),
    )(*args)


def _pad_logits_head(w2, b2, lanes=_LANES):
    # Zero-pad the class columns of W2 and set padded bias to -1e9 so a full
    # 128-lane (log-)softmax is exact on the real class columns (lane-dense
    # store; no vst.msk partial stores).
    d, c = w2.shape
    w2p = jnp.zeros((d, lanes), _F32).at[:, :c].set(w2.astype(_F32)).astype(_BF16)
    b2p = jnp.full((1, lanes), -1e9, _F32).at[:, :c].set(b2)
    return w2p, b2p


# ---------------------------------------------------------------------------
# Parameter initialization (deterministic; weights bf16, biases / BN f32)
# ---------------------------------------------------------------------------

def init_params(key, *, bert_size, reduced_size, hidden_dim, dense_size,
                n_etypes, num_classes, num_conv_layers):
    keys = iter(jax.random.split(key, 64))

    def lin(i, o):
        w = (jax.random.normal(next(keys), (i, o), _F32)
             / jnp.sqrt(float(i))).astype(_BF16)
        b = jnp.zeros((1, o), _F32)
        return w, b

    def bn(c):
        # matches module init: weight = 1, bias = 1e-4
        return jnp.ones((1, c), _F32), jnp.full((1, c), 1e-4, _F32)

    p = {}
    p["reduce_w"], p["reduce_b"] = lin(bert_size, reduced_size)
    p["bn_feature"] = bn(reduced_size)

    p["rel_w"] = (jax.random.normal(next(keys),
                                    (n_etypes, reduced_size, hidden_dim), _F32)
                  / jnp.sqrt(float(reduced_size))).astype(_BF16)
    p["rel_loop_w"], p["rel_b"] = lin(reduced_size, hidden_dim)

    p["convs"] = [lin(hidden_dim, hidden_dim) for _ in range(num_conv_layers)]
    p["bns_conv"] = [bn(hidden_dim) for _ in range(num_conv_layers)]

    eaw = (jax.random.normal(next(keys), (2 * hidden_dim, 2), _F32)
           / jnp.sqrt(float(2 * hidden_dim))).astype(_BF16)
    p["edge_att_w_src"] = eaw[:hidden_dim]     # half acting on x[src]
    p["edge_att_w_dst"] = eaw[hidden_dim:]     # half acting on x[dst]
    p["edge_att_b"] = jnp.zeros((1, 2), _F32)
    p["node_att_w"], p["node_att_b"] = lin(hidden_dim, 2)

    p["bn_causal"] = bn(hidden_dim)
    p["bn_spurious"] = bn(hidden_dim)
    p["causal_conv_w"], p["causal_conv_b"] = lin(hidden_dim, hidden_dim)
    p["spurious_conv_w"], p["spurious_conv_b"] = lin(hidden_dim, hidden_dim)

    for name, in_dim in (("causal", hidden_dim), ("spurious", hidden_dim),
                         ("concat", 2 * hidden_dim)):
        p[f"{name}_fc1_bn"] = bn(in_dim)
        p[f"{name}_fc1_w"], p[f"{name}_fc1_b"] = lin(in_dim, dense_size)
        p[f"{name}_fc2_bn"] = bn(dense_size)
        p[f"{name}_fc2_w"], p[f"{name}_fc2_b"] = lin(dense_size, num_classes)
    return p


# ---------------------------------------------------------------------------
# Forward pass
# ---------------------------------------------------------------------------

def causal_vul_gnn_forward(p, features, src, dst, etypes, node_graph_ids,
                           n_graphs, n_etypes, num_conv_layers, perm):
    N = features.shape[0]
    H = p["rel_loop_w"].shape[1]

    # --- glue: dense graph structure (plain JAX) ---
    # TODO(synk): for large graphs, replace dense f32 scatter temporaries with
    # segment-sum construction directly in the storage dtype.
    def _norm_rows(a):
        return (a / jnp.maximum(jnp.sum(a, axis=-1, keepdims=True), 1e-6)
                ).astype(_BF16)

    adj_rel = (jnp.zeros((n_etypes, N, N), _F32)
               .at[etypes, dst, src].add(1.0)).astype(_BF16)
    adj_cnt = jnp.zeros((N, N), _F32).at[dst, src].add(1.0)
    adj_norm = _norm_rows(adj_cnt)     # degree-normalized ONCE, reused per layer

    member = jax.nn.one_hot(node_graph_ids, n_graphs, dtype=_F32).T
    member = (member / jnp.maximum(member.sum(axis=1, keepdims=True), 1.0)
              ).astype(_BF16)

    # --- K1: fused node-feature reducer + BN (dropout p=0 -> identity) ---
    h = reduce_and_bn(features, p["reduce_w"], p["reduce_b"], *p["bn_feature"])

    # --- K2: relational GNN + ReLU ---
    x = relgraphconv(h, adj_rel, p["rel_w"], p["rel_loop_w"], p["rel_b"])

    # --- K3: all [BN -> graph conv -> ReLU] layers in ONE pallas_call ---
    L = num_conv_layers
    if L > 0:
        g_stack = jnp.stack([p["bns_conv"][i][0] for i in range(L)])
        be_stack = jnp.stack([p["bns_conv"][i][1] for i in range(L)])
        w_stack = jnp.stack([p["convs"][i][0] for i in range(L)])
        b_stack = jnp.stack([p["convs"][i][1] for i in range(L)])
        x = conv_stack(x, adj_norm, g_stack, be_stack, w_stack, b_stack)

    # --- K4: packed attention projections + node scaling ---
    w_pk = jnp.zeros((H, _LANES), _F32)
    w_pk = w_pk.at[:, 0:2].set(p["node_att_w"].astype(_F32))
    w_pk = w_pk.at[:, 2:4].set(p["edge_att_w_src"].astype(_F32))
    w_pk = w_pk.at[:, 4:6].set(p["edge_att_w_dst"].astype(_F32))
    w_pk = w_pk.astype(_BF16)
    b_pk = jnp.zeros((1, _LANES), _F32).at[:, 0:2].set(p["node_att_b"])

    x_causal, x_spurious, proj = attention_block(x, w_pk, b_pk)

    node_att = jax.nn.softmax(proj[:, 0:2], axis=-1)
    # project-then-gather: x[src] @ W == (x @ W)[src]
    e_logits = proj[:, 2:4][src] + proj[:, 4:6][dst] + p["edge_att_b"]
    edge_att = jax.nn.softmax(e_logits, axis=-1)

    adj_c = _norm_rows(jnp.zeros((N, N), _F32).at[dst, src].add(edge_att[:, 0]))
    adj_s = _norm_rows(jnp.zeros((N, N), _F32).at[dst, src].add(edge_att[:, 1]))

    # --- K5: fused BN -> weighted conv -> ReLU -> per-graph mean ---
    xg_causal = bn_graphconv_mean(x_causal, *p["bn_causal"], adj_c,
                                  p["causal_conv_w"], p["causal_conv_b"], member)
    xg_spurious = bn_graphconv_mean(x_spurious, *p["bn_spurious"], adj_s,
                                    p["spurious_conv_w"], p["spurious_conv_b"],
                                    member)

    # --- K6: all three readout heads in ONE pallas_call ---
    # random_readout_layer: deterministic permutation instead of random.shuffle
    x_cat = jnp.concatenate([xg_causal, jnp.take(xg_spurious, perm, axis=0)],
                            axis=1)

    def head_params(name):
        w2p, wb2p = _pad_logits_head(p[f"{name}_fc2_w"], p[f"{name}_fc2_b"])
        return (p[f"{name}_fc1_bn"][0], p[f"{name}_fc1_bn"][1],
                p[f"{name}_fc1_w"], p[f"{name}_fc1_b"],
                p[f"{name}_fc2_bn"][0], p[f"{name}_fc2_bn"][1],
                w2p, wb2p)

    oc_pad, os_pad, ot_pad = readout_heads(
        xg_causal, xg_spurious, x_cat,
        head_params("causal"), head_params("spurious"), head_params("concat"))

    C = p["causal_fc2_w"].shape[1]
    out_causal = oc_pad[:, :C]
    out_spurious = os_pad[:, :C]
    out_context = ot_pad[:, :C]

    return (out_causal, out_spurious, out_context,
            [xg_causal, xg_spurious], node_att, edge_att)


# ---------------------------------------------------------------------------
# Example run
# ---------------------------------------------------------------------------

if __name__ == "__main__":
    # small-shape config consistent with the module
    BERT = 256          # (module default 768; shrunk for a small example)
    REDUCED = 128
    HIDDEN = 128
    DENSE = 32
    N_ETYPES = 5
    N_CLASSES = 2
    N_CONV = 2

    G = 2               # graphs in the batch
    NODES_PER_G = 8
    N = G * NODES_PER_G
    E_PER_G = 16
    E = G * E_PER_G

    key = jax.random.PRNGKey(0)
    k_param, k_feat, k_src, k_dst, k_ety = jax.random.split(key, 5)

    params = init_params(k_param, bert_size=BERT, reduced_size=REDUCED,
                         hidden_dim=HIDDEN, dense_size=DENSE,
                         n_etypes=N_ETYPES, num_classes=N_CLASSES,
                         num_conv_layers=N_CONV)

    features = jax.random.normal(k_feat, (N, BERT), _F32).astype(_BF16)

    # edges stay within their own graph
    src_local = jax.random.randint(k_src, (G, E_PER_G), 0, NODES_PER_G)
    dst_local = jax.random.randint(k_dst, (G, E_PER_G), 0, NODES_PER_G)
    offsets = (jnp.arange(G) * NODES_PER_G)[:, None]
    src = (src_local + offsets).reshape(-1)
    dst = (dst_local + offsets).reshape(-1)
    etypes = jax.random.randint(k_ety, (E,), 0, N_ETYPES)
    node_graph_ids = jnp.repeat(jnp.arange(G), NODES_PER_G)

    perm = jax.random.permutation(jax.random.PRNGKey(1), G)

    outs = causal_vul_gnn_forward(params, features, src, dst, etypes,
                                  node_graph_ids, G, N_ETYPES, N_CONV, perm)
    jax.block_until_ready(outs)

    out_causal, out_spurious, out_context, reps, node_att, edge_att = outs
    assert out_causal.shape == (G, N_CLASSES)
    assert out_spurious.shape == (G, N_CLASSES)
    assert out_context.shape == (G, N_CLASSES)
    assert reps[0].shape == (G, HIDDEN) and reps[1].shape == (G, HIDDEN)
    assert node_att.shape == (N, 2) and edge_att.shape == (E, 2)
    print("KERNEL_OK")
</pallas_src>

<mosaic_0001>
module attributes {stable_mosaic.version = 11 : i64} {
  func.func @_reduce_bn_kernel(%arg0: i32, %arg1: memref<16x128xbf16, #tpu.memory_space<vmem>>, %arg2: memref<128x128xbf16, #tpu.memory_space<vmem>>, %arg3: memref<1x128xf32, #tpu.memory_space<vmem>>, %arg4: memref<1x128xf32, #tpu.memory_space<vmem>>, %arg5: memref<1x128xf32, #tpu.memory_space<vmem>>, %arg6: memref<16x128xbf16, #tpu.memory_space<vmem>>, %arg7: memref<16x128xf32, #tpu.memory_space<vmem>>) attributes {dimension_semantics = [#tpu.dimension_semantics<arbitrary>], iteration_bounds = array<i64: 2>, scalar_prefetch = 0 : i64, scratch_operands = 1 : i64, tpu.core_type = #tpu.core_type<tc>, window_params = [{transform_indices = @transform_0, window_bounds = array<i64: 16, 128>}, {transform_indices = @transform_1, window_bounds = array<i64: 128, 128>}, {pipeline_mode = #tpu.pipeline_mode<synchronous>, transform_indices = @transform_2, window_bounds = array<i64: 1, 128>}, {pipeline_mode = #tpu.pipeline_mode<synchronous>, transform_indices = @transform_3, window_bounds = array<i64: 1, 128>}, {pipeline_mode = #tpu.pipeline_mode<synchronous>, transform_indices = @transform_4, window_bounds = array<i64: 1, 128>}, {pipeline_mode = #tpu.pipeline_mode<synchronous>, transform_indices = @transform_5, window_bounds = array<i64: 16, 128>}]} {
    %c0_i32 = arith.constant 0 : i32
    %0 = arith.cmpi eq, %arg0, %c0_i32 : i32
    %1 = arith.extui %0 : i1 to i32
    %c0_i32_0 = arith.constant 0 : i32
    %2 = arith.cmpi ne, %1, %c0_i32_0 : i32
    scf.if %2 {
      %cst_9 = arith.constant 0.000000e+00 : f32
      %12 = vector.broadcast %cst_9 : f32 to vector<16x128xf32>
      %c0_10 = arith.constant 0 : index
      %c0_11 = arith.constant 0 : index
      %13 = vector.load %arg7[%c0_10, %c0_11] : memref<16x128xf32, #tpu.memory_space<vmem>>, vector<16x128xf32>
      tpu.vector_store %arg7[%c0_10, %c0_11], %12 {strides = array<i32>} : memref<16x128xf32, #tpu.memory_space<vmem>>, vector<16x128xf32>,
    } else {
    }
    %c0 = arith.constant 0 : index
    %c0_1 = arith.constant 0 : index
    %3 = vector.load %arg7[%c0, %c0_1] : memref<16x128xf32, #tpu.memory_space<vmem>>, vector<16x128xf32>
    %c0_2 = arith.constant 0 : index
    %c0_3 = arith.constant 0 : index
    %4 = vector.load %arg1[%c0_2, %c0_3] : memref<16x128xbf16, #tpu.memory_space<vmem>>, vector<16x128xbf16>
    %c0_4 = arith.constant 0 : index
    %c0_5 = arith.constant 0 : index
    %5 = vector.load %arg2[%c0_4, %c0_5] : memref<128x128xbf16, #tpu.memory_space<vmem>>, vector<128x128xbf16>
    %cst = arith.constant dense<0.000000e+00> : vector<16x128xf32>
    %6 = tpu.matmul %4, %5, %cst {dimension_numbers = #tpu.dot_dimension_numbers<[1], [0], [0], [1], [0, 0, 1, 1], [], []>} : vector<16x128xbf16>, vector<128x128xbf16>, vector<16x128xf32> -> vector<16x128xf32>
    %7 = arith.addf %3, %6 : vector<16x128xf32>
    %c0_6 = arith.constant 0 : index
    %c0_7 = arith.constant 0 : index
    %8 = vector.load %arg7[%c0_6, %c0_7] : memref<16x128xf32, #tpu.memory_space<vmem>>, vector<16x128xf32>
    tpu.vector_store %arg7[%c0_6, %c0_7], %7 {strides = array<i32>} : memref<16x128xf32, #tpu.memory_space<vmem>>, vector<16x128xf32>,
    %c1_i32 = arith.constant 1 : i32
    %9 = arith.cmpi eq, %arg0, %c1_i32 : i32
    %10 = arith.extui %9 : i1 to i32
    %c0_i32_8 = arith.constant 0 : i32
    %11 = arith.cmpi ne, %10, %c0_i32_8 : i32
    scf.if %11 {
      %c0_9 = arith.constant 0 : index
      %c0_10 = arith.constant 0 : index
      %12 = vector.load %arg7[%c0_9, %c0_10] : memref<16x128xf32, #tpu.memory_space<vmem>>, vector<16x128xf32>
      %c0_11 = arith.constant 0 : index
      %c0_12 = arith.constant 0 : index
      %13 = vector.load %arg3[%c0_11, %c0_12] : memref<1x128xf32, #tpu.memory_space<vmem>>, vector<1x128xf32>
      %14 = vector.broadcast %13 : vector<1x128xf32> to vector<16x128xf32>
      %15 = arith.addf %12, %14 : vector<16x128xf32>
      %c0_13 = arith.constant 0 : index
      %c0_14 = arith.constant 0 : index
      %16 = vector.load %arg4[%c0_13, %c0_14] : memref<1x128xf32, #tpu.memory_space<vmem>>, vector<1x128xf32>
      %c0_15 = arith.constant 0 : index
      %c0_16 = arith.constant 0 : index
      %17 = vector.load %arg5[%c0_15, %c0_16] : memref<1x128xf32, #tpu.memory_space<vmem>>, vector<1x128xf32>
      %cst_17 = arith.constant dense<0.000000e+00> : vector<128xf32>
      %18 = vector.multi_reduction <add>, %15, %cst_17 [0] : vector<16x128xf32> to vector<128xf32>
      %19 = vector.shape_cast %18 : vector<128xf32> to vector<1x128xf32>
      %cst_18 = arith.constant 1.600000e+01 : f32
      %20 = vector.broadcast %cst_18 : f32 to vector<1x128xf32>
      %21 = arith.divf %19, %20 : vector<1x128xf32>
      %22 = arith.mulf %15, %15 : vector<16x128xf32>
      %cst_19 = arith.constant dense<0.000000e+00> : vector<128xf32>
      %23 = vector.multi_reduction <add>, %22, %cst_19 [0] : vector<16x128xf32> to vector<128xf32>
      %24 = vector.shape_cast %23 : vector<128xf32> to vector<1x128xf32>
      %cst_20 = arith.constant 1.600000e+01 : f32
      %25 = vector.broadcast %cst_20 : f32 to vector<1x128xf32>
      %26 = arith.divf %24, %25 : vector<1x128xf32>
      %27 = arith.mulf %21, %21 : vector<1x128xf32>
      %28 = arith.subf %26, %27 : vector<1x128xf32>
      %29 = vector.broadcast %21 : vector<1x128xf32> to vector<16x128xf32>
      %30 = arith.subf %15, %29 : vector<16x128xf32>
      %cst_21 = arith.constant 9.99999974E-6 : f32
      %31 = vector.broadcast %cst_21 : f32 to vector<1x128xf32>
      %32 = arith.addf %28, %31 : vector<1x128xf32>
      %33 = math.rsqrt %32 : vector<1x128xf32>
      %34 = vector.broadcast %33 : vector<1x128xf32> to vector<16x128xf32>
      %35 = arith.mulf %30, %34 : vector<16x128xf32>
      %36 = vector.broadcast %16 : vector<1x128xf32> to vector<16x128xf32>
      %37 = arith.mulf %35, %36 : vector<16x128xf32>
      %38 = vector.broadcast %17 : vector<1x128xf32> to vector<16x128xf32>
      %39 = arith.addf %37, %38 : vector<16x128xf32>
      %40 = arith.truncf %39 : vector<16x128xf32> to vector<16x128xbf16>
      %c0_22 = arith.constant 0 : index
      %c0_23 = arith.constant 0 : index
      %41 = vector.load %arg6[%c0_22, %c0_23] : memref<16x128xbf16, #tpu.memory_space<vmem>>, vector<16x128xbf16>
      tpu.vector_store %arg6[%c0_22, %c0_23], %40 {strides = array<i32>} : memref<16x128xbf16, #tpu.memory_space<vmem>>, vector<16x128xbf16>,
    } else {
    }
    return
  }
  func.func @transform_0(%arg0: i32) -> (i32, i32) {
    %c0_i32 = arith.constant 0 : i32
    %c0_i32_0 = arith.constant 0 : i32
    return %c0_i32, %arg0 : i32, i32
  }
  func.func @transform_1(%arg0: i32) -> (i32, i32) {
    %c0_i32 = arith.constant 0 : i32
    %c0_i32_0 = arith.constant 0 : i32
    return %arg0, %c0_i32 : i32, i32
  }
  func.func @transform_2(%arg0: i32) -> (i32, i32) {
    %c0_i32 = arith.constant 0 : i32
    %c0_i32_0 = arith.constant 0 : i32
    %c0_i32_1 = arith.constant 0 : i32
    return %c0_i32, %c0_i32_0 : i32, i32
  }
  func.func @transform_3(%arg0: i32) -> (i32, i32) {
    %c0_i32 = arith.constant 0 : i32
    %c0_i32_0 = arith.constant 0 : i32
    %c0_i32_1 = arith.constant 0 : i32
    return %c0_i32, %c0_i32_0 : i32, i32
  }
  func.func @transform_4(%arg0: i32) -> (i32, i32) {
    %c0_i32 = arith.constant 0 : i32
    %c0_i32_0 = arith.constant 0 : i32
    %c0_i32_1 = arith.constant 0 : i32
    return %c0_i32, %c0_i32_0 : i32, i32
  }
  func.func @transform_5(%arg0: i32) -> (i32, i32) {
    %c0_i32 = arith.constant 0 : i32
    %c0_i32_0 = arith.constant 0 : i32
    %c0_i32_1 = arith.constant 0 : i32
    return %c0_i32, %c0_i32_0 : i32, i32
  }
}

</mosaic_0001>

<bundles_post_ra>
// kernel: tpu_custom_call.1
= control target key start
LH: loop header
LB: loop body
LE: loop exit
PB: predicated region body
PF: predicated region fallthrough
CT: control target
= control target key end

     0   :  { %10 = vsyncpa [#allocation4], 0  ;;  %s1059_s0 = inlined_call_operand.hbm [shape: bf16[16,256], index: 0, kind: input, shape index: {}]   ;;  %s1060_s1 = inlined_call_operand.hbm [shape: bf16[256,128], index: 1, kind: input, shape index: {}]   ;;  %s1061_s2 = inlined_call_operand.vmem [shape: f32[1,128], index: 2, kind: input, shape index: {}]   ;;  %s1062_s3 = inlined_call_operand.vmem [shape: f32[1,128], index: 3, kind: input, shape index: {}]   ;;  %s1063_s4 = inlined_call_operand.vmem [shape: f32[1,128], index: 4, kind: input, shape index: {}]   ;;  %s1064_s5 = inlined_call_operand.hbm [shape: bf16[16,128], index: 5, kind: output, shape index: {}]  }
   0x1   :  { %12 = vsyncpa [#allocation4 + $0x1], 0 }
   0x2   :  { %13 = vsyncpa [#allocation7], 0 }
   0x3   :  { %15 = vsyncpa [#allocation7 + $0x1], 0 }
   0x4   :  { %16 = vsyncpa [#allocation5], 0  ;;  %s858_s18 = smov 0   ;;  %s860_s19 = smov 0  }
   0x5   :  { %s862_s20 = smov 0   ;;  %s864_s21 = smov 0  }
   0x6 LB: > { %s877_s22 = sadd.s32 4294967295, %s815_s21   ;;  %s880_s23 = sadd.s32 1, %s815_s21   ;;  %s815_s21 = sphi %s864_s21, %s1073_s21   ;;  %s811_s20 = sphi %s862_s20, %s1072_s20   ;;  %s807_s19 = sphi %s860_s19, %s1071_s19   ;;  %s803_s18 = sphi %s858_s18, %s1070_s18  }
   0x7   : > { %s26_s24 = ssub.s32 %s815_s21, %s880_s23  ;;  %s29_s25 = sadd.s32 1, %s811_s20 }
   0x8   : > { %p27_p0 = scmp.eq.s32.totalorder %s26_s24, 0  ;;  %p36_p1 = scmp.ne.s32.totalorder %s811_s20, %s807_s19 }
   0x9   : > { %p37_p2 = scmp.eq.s32.totalorder %s815_s21, 0  ;;  %p42_p3 = scmp.ne.s32.totalorder %s807_s19, %s803_s18 }
   0xa   : > { %s890_s26 = scalar_select %p27_p0, %s811_s20, %s29_s25  }
   0xb   : > { %p38_p4 = por %p37_p2, %p36_p1  ;;  %p43_p5 = scmp.eq.s32.totalorder %s877_s22, 0 }
   0xc   : > { %p632_p6 = scmp.lt.s32.totalorder %s815_s21, 2  ;;  %s899_s28 = sand.u32 1, %s811_s20  }
   0xd   : > { %p894_p7 = por %p43_p5, %p42_p3  ;;  %s552_s29 = sshll.u32 %s899_s28, 3 }
   0xe   : > { %s553_s30 = sshll.u32 %s815_s21, 6  ;;  %s189_s9 = scalar_lea.vmem [#allocation3], %s552_s29 }
   0xf   : > { %s1066_s27 = scalar_select %p894_p7, 1, 0 }
  0x10   : > { %s906_s8 = scalar_lea.hbm %s1059_s0, %s553_s30  ;;  %s195_s10 = sshll.u32 %s189_s9, 4  ;;  %s908_s10 = int_to_ptr.vmem [resolvable:$true] %s195_s10 }
  0x11   : > { %p910_p8 = pnand %p632_p6, %p38_p4  ;;  %s186_s12 = scalar_lea.sflag [#allocation4], %s899_s28 }
  0x12   : > { %s687_s13 = scalar_lea.hbm %s906_s8, 128  ;;  %s692_s16 = scalar_lea.hbm %s1059_s0, 256 }
  0x13   : > { %p688_p9 = scmp.ne.s32.totalorder %s906_s8, %s687_s13  ;;  %p689_p10 = pneg %p910_p8 }
  0x14   : > { %p693_p13 = scmp.lt.u32.totalorder %s906_s8, %s1059_s0  ;;  %p694_p0 = scmp.lt.u32.totalorder %s692_s16, %s687_s13 }
  0x15   : > { %p690_p11 = pnand %p689_p10, %p688_p9  ;;  %p696_p2 = scmp.lt.u32.totalorder %s687_s13, %s906_s8 }
  0x16   : > { %p695_p1 = por %p694_p0, %p693_p13 }
  0x17   : > { %p691_p12 = pneg %p690_p11 }
  0x18   : > { %p697_p3 = por %p696_p2, %p695_p1 }
  0x1a   : > { %p698_p4 = pnand %p697_p3, %p691_p12 }
  0x1c   : > { %701 = shalt.err (!%p698_p4)
}
  0x1d   : > { %s702_s24 = scalar_lea.vmem %s908_s10, 128  ;;  %s817_s25 = smov [#allocation3]  }
  0x1e   : > { %p703_p5 = scmp.ne.s32.totalorder %s908_s10, %s702_s24  ;;  %s707_s29 = sshll.u32 %s817_s25, 4  ;;  %s708_s29 = int_to_ptr.vmem [resolvable:$false] %s707_s29 }
  0x1f   : > { %s709_s30 = scalar_lea.vmem %s708_s29, 256  ;;  %p710_p11 = scmp.lt.s32.totalorder %s908_s10, %s708_s29 }
  0x20   : > { %p705_p6 = pnand %p703_p5, %p689_p10  ;;  %p711_p13 = scmp.lt.s32.totalorder %s709_s30, %s702_s24 }
  0x22   : > { %p706_p9 = pneg %p705_p6  ;;  %p712_p0 = por %p711_p13, %p710_p11 }
  0x24   : > { %p713_p1 = pnand %p712_p0, %p706_p9 }
  0x26   : > { %716 = shalt.err (!%p713_p1)
}
  0x27   : > { %s818_s6 = smov 128   ;;  %s819_s7 = smov 64  }
  0x28   : > { %s820_s9 = smov 4   ;;  %p557_p12 = scmp.ge.s32.totalorder %s815_s21, 1 }
  0x29   : > { %628 = dma.hbm_to_vmem [thread:$0]  (!%p910_p8), %s906_s8, 128, %s908_s10, %s186_s12, %s818_s6, %s819_s7, %s820_s9  }
  0x2a   : > { %p224_p2 = scmp.lt.s32.totalorder %s815_s21, 3  ;;  %s554_s13 = sshll.u32 %s899_s28, 6 }
  0x2b   : > { %s580_s15 = sshll.u32 %s815_s21, 10  ;;  %s209_s16 = scalar_lea.vmem [#allocation6], %s554_s13 }
  0x2c   : > { %p947_p3 = pnand %p557_p12, %p224_p2  ;;  %s216_s17 = sshll.u32 %s209_s16, 4  ;;  %s957_s17 = int_to_ptr.vmem [resolvable:$true] %s216_s17 }
  0x2d   : > { %s955_s25 = scalar_lea.hbm %s1060_s1, %s580_s15  ;;  %s206_s8 = scalar_lea.sflag [#allocation7], %s899_s28 }
  0x2e   : > { %s717_s10 = scalar_lea.hbm %s955_s25, 1024  ;;  %s722_s29 = scalar_lea.hbm %s1060_s1, 2048 }
  0x2f   : > { %p718_p4 = scmp.ne.s32.totalorder %s955_s25, %s717_s10  ;;  %p723_p9 = scmp.lt.u32.totalorder %s955_s25, %s1060_s1 }
  0x30   : > { %p724_p11 = scmp.lt.u32.totalorder %s722_s29, %s717_s10  ;;  %p726_p0 = scmp.lt.u32.totalorder %s717_s10, %s955_s25 }
  0x31   : > { %p720_p5 = pnand %p718_p4, %p689_p10 }
  0x32   : > { %p725_p13 = por %p724_p11, %p723_p9 }
  0x33   : > { %p721_p6 = pneg %p720_p5 }
  0x34   : > { %p727_p1 = por %p726_p0, %p725_p13 }
  0x36   : > { %p728_p12 = pnand %p727_p1, %p721_p6 }
  0x38   : > { %731 = shalt.err (!%p728_p12)
}
  0x39   : > { %s732_s13 = scalar_lea.vmem %s957_s17, 1024  ;;  %s821_s15 = smov [#allocation6]  }
  0x3a   : > { %p733_p2 = scmp.ne.s32.totalorder %s957_s17, %s732_s13  ;;  %s737_s16 = sshll.u32 %s821_s15, 4  ;;  %s738_s16 = int_to_ptr.vmem [resolvable:$false] %s737_s16 }
  0x3b   : > { %s739_s18 = scalar_lea.vmem %s738_s16, 2048  ;;  %p740_p7 = scmp.lt.s32.totalorder %s957_s17, %s738_s16 }
  0x3c   : > { %p735_p4 = pnand %p733_p2, %p689_p10  ;;  %p741_p9 = scmp.lt.s32.totalorder %s739_s18, %s732_s13 }
  0x3e   : > { %p736_p5 = pneg %p735_p4  ;;  %p742_p11 = por %p741_p9, %p740_p7 }
  0x40   : > { %p743_p13 = pnand %p742_p11, %p736_p5 }
  0x42   : > { %746 = shalt.err (!%p743_p13)
}
  0x43   : > { %631 = dma.hbm_to_vmem [thread:$0]  (!%p910_p8), %s955_s25, 1024, %s957_s17, %s206_s8, %s819_s7, %s819_s7, %s820_s9  }
  0x44   : > { %228 = sbr.rel (%p947_p3) target bundleno = 415 (0x19f), region = 40  ;;  %s230_s24 = sand.u32 (!%p947_p3), 1, %s807_s19  }
  0x45   : > { %s558_s10 = sshll.u32 (!%p947_p3), %s230_s24, 3  ;;  %s231_s21 = scalar_lea.sflag (!%p947_p3), [#allocation4], %s230_s24 }
  0x46   : > { %s991_s12 = scalar_lea.vmem (!%p947_p3), [#allocation3], %s558_s10  ;;  %p1069_p7 = scmp.ne.s32.totalorder (!%p947_p3), %s1066_s27, 0 }
  0x4b   : > { %790 = dma.done.wait (%p1069_p7), %s231_s21, 128  }
  0x4c   : > { %792 = vsyncadd (%p1069_p7), %s231_s21, 4294967168  ;;  %s559_s28 = sshll.u32 %s230_s24, 6  ;;  %s240_s11 = scalar_lea.sflag [#allocation7], %s230_s24 }
  0x4d   : > { %s997_s29 = scalar_lea.vmem [#allocation6], %s559_s28 }
  0x4e   : > { %794 = dma.done.wait (%p1069_p7), %s240_s11, 1024  }
  0x4f   : > { %796 = vsyncadd (%p1069_p7), %s240_s11, 4294966272  ;;  %p560_p8 = scmp.ne.s32.totalorder %s877_s22, 0 }
  0x50   : > { %v822_v0 = vmov (!%p560_p8), 0.0  }
  0x51   : > { %275 = sbr.rel (%p560_p8) target bundleno = 88 (0x58), region = 52  ;;  %276 = vst [vmem:[#allocation2] sm:$0xff] (!%p560_p8), %v822_v0  ;;  %277 = vst [vmem:[#allocation2 + $0x8] sm:$0xff] (!%p560_p8), %v822_v0 }
  0x58 PF: > { %v676_v1 = vld [vmem:[%s997_s29] sm:$0xff]   ;;  %v823_v2 = vmov 0.0   ;;  %v677_v3 = vld [vmem:[%s997_s29 + $0x8] sm:$0xff]   ;;  %vm824_vm0 = vmmov 0   ;;  %v678_v4 = vld [vmem:[%s997_s29 + $0x10] sm:$0xff]   ;;  %p570_p10 = scmp.ne.s32.totalorder %s877_s22, 1 }
  0x59   : > { %597 = vmatprep.subr.bf16.mxu0 %v823_v2  ;;  %613 = vmatprep.mubr.msk.bf16.mxu0 %vm824_vm0, %v823_v2  ;;  %v679_v5 = vld [vmem:[%s997_s29 + $0x18] sm:$0xff]   ;;  %v680_v6 = vld [vmem:[%s997_s29 + $0x20] sm:$0xff]   ;;  %v681_v7 = vld [vmem:[%s997_s29 + $0x28] sm:$0xff]  }
  0x5a   : > { %598 = vmatpush3.bf16.msra.mxu0 %v676_v1  ;;  %v682_v8 = vld [vmem:[%s997_s29 + $0x30] sm:$0xff]   ;;  %v683_v9 = vld [vmem:[%s997_s29 + $0x38] sm:$0xff]   ;;  %v278_v11 = vld [vmem:[#allocation2] sm:$0xff] }
  0x5b   : > { %599 = vmatprep.subr.bf16.mxu0 %v823_v2  ;;  %v684_v10 = vld [vmem:[%s991_s12] sm:$0xff]   ;;  %v279_v13 = vld [vmem:[#allocation2 + $0x8] sm:$0xff]  ;;  %v571_v21 = vld [vmem:[%s1061_s2] ss:$0 sm:$0xff] (!%p570_p10) }
  0x5c   : > { %v572_v48 = vld [vmem:[%s1062_s3] ss:$0 sm:$0xff] (!%p570_p10) }
  0x5d   : > { %v573_v51 = vld [vmem:[%s1063_s4] ss:$0 sm:$0xff] (!%p570_p10) }
  0x5e   : > { %600 = vmatpush3.bf16.msra.mxu0 %v677_v3 }
  0x5f   : > { %601 = vmatprep.subr.bf16.mxu0 %v823_v2 }
  0x62   : > { %602 = vmatpush3.bf16.msra.mxu0 %v678_v4 }
  0x63   : > { %603 = vmatprep.subr.bf16.mxu0 %v823_v2 }
  0x66   : > { %604 = vmatpush3.bf16.msra.mxu0 %v679_v5 }
  0x67   : > { %605 = vmatprep.subr.bf16.mxu0 %v823_v2 }
  0x6a   : > { %606 = vmatpush3.bf16.msra.mxu0 %v680_v6 }
  0x6b   : > { %607 = vmatprep.subr.bf16.mxu0 %v823_v2 }
  0x6e   : > { %608 = vmatpush3.bf16.msra.mxu0 %v681_v7 }
  0x6f   : > { %609 = vmatprep.subr.bf16.mxu0 %v823_v2 }
  0x72   : > { %610 = vmatpush3.bf16.msra.mxu0 %v682_v8 }
  0x73   : > { %611 = vmatprep.subr.bf16.mxu0 %v823_v2 }
  0x76   : > { %612 = vmatpush3.bf16.msra.mxu0 %v683_v9 }
  0x79   : > { %614 = vmatmul.mubr.bf16.vlgmr.msra.gmra.mrb[0].mxu0 %v684_v10 }
 0x14b   : > { %400 = sbr.rel (%p570_p10) target bundleno = 389 (0x185), region = 56 }
 0x14c   : > { %v386_v12 = vpop.f32.mrb[0].mxu0 }
 0x14d   : > { %v393_v14 = vadd.f32 %v386_v12, %v278_v11  ;;  %v615_v15 = vpop.f32.mrb[1].mxu0 }
 0x14e   : > { %v389_v16 = vpop.f32.mrb[2].mxu0 }
 0x14f   : > { %395 = vst [vmem:[#allocation2] sm:$0xff] %v393_v14  ;;  %v394_v17 = vadd.f32 %v389_v16, %v279_v13  ;;  %v616_v18 = vpop.f32.mrb[3].mxu0 }
 0x151   : > { %396 = vst [vmem:[#allocation2 + $0x8] sm:$0xff] %v394_v17 }
 0x156   : > { %v401_v19 = vld [vmem:[#allocation2] sm:$0xff] }
 0x157   : > { %v410_v22 = vadd.f32 %v571_v21, %v401_v19 }
 0x158   : > { %v402_v20 = vld [vmem:[#allocation2 + $0x8] sm:$0xff] }
 0x159   : > { %v411_v23 = vadd.f32 %v571_v21, %v402_v20  ;;  %v423_v25 = vmul.f32 %v410_v22, %v410_v22 }
 0x15b   : > { %v414_v24 = vadd.f32 %v411_v23, %v410_v22  ;;  %v424_v26 = vmul.f32 %v411_v23, %v411_v23 }
 0x15d   : > { %v415_v27 = vrot.slane %v414_v24, 4  ;;  %v425_v28 = vadd.f32 %v424_v26, %v423_v25 }
 0x15f   : > { %v416_v29 = vadd.f32 %v415_v27, %v414_v24  ;;  %v426_v30 = vrot.slane %v425_v28, 4 }
 0x161   : > { %v417_v31 = vrot.slane %v416_v29, 2  ;;  %v427_v32 = vadd.f32 %v426_v30, %v425_v28 }
 0x163   : > { %v418_v33 = vadd.f32 %v417_v31, %v416_v29  ;;  %v428_v34 = vrot.slane %v427_v32, 2 }
 0x165   : > { %v419_v35 = vrot.slane %v418_v33, 1  ;;  %v429_v36 = vadd.f32 %v428_v34, %v427_v32 }
 0x167   : > { %v420_v37 = vadd.f32 %v419_v35, %v418_v33  ;;  %v430_v38 = vrot.slane %v429_v36, 1 }
 0x169   : > { %v422_v39 = vmul.f32 0.0625, %v420_v37  ;;  %v431_v40 = vadd.f32 %v430_v38, %v429_v36 }
 0x16b   : > { %v432_v41 = vmul.f32 0.0625, %v431_v40  ;;  %v433_v42 = vmul.f32 %v422_v39, %v422_v39  ;;  %v435_v45 = vsub.f32 %v410_v22, %v422_v39  ;;  %v436_v46 = vsub.f32 %v411_v23, %v422_v39 }
 0x16d   : > { %v434_v43 = vsub.f32 %v432_v41, %v433_v42 }
 0x16f   : > { %v437_v44 = vadd.f32 1e-05, %v434_v43 }
 0x171   : > { %685 = vrsqrt.f32 %v437_v44 }
 0x17b   : > { %v686_v47 = vpop.eup %685 }
 0x17c   : > { %v439_v49 = vmul.f32 %v686_v47, %v435_v45  ;;  %v440_v50 = vmul.f32 %v686_v47, %v436_v46 }
 0x17e   : > { %v447_v52 = vmul.f32 %v572_v48, %v439_v49  ;;  %v448_v53 = vmul.f32 %v572_v48, %v440_v50 }
 0x180   : > { %v455_v54 = vadd.f32 %v573_v51, %v447_v52  ;;  %v456_v55 = vadd.f32 %v573_v51, %v448_v53 }
 0x182   : > { %v586_v56 = vpack.c.bf16 %v456_v55, %v455_v54 }
 0x184   : > { %587 = vst [vmem:[#allocation8] sm:$0xff] %v586_v56  }
 0x185 PF: > { %p633_p3 = scmp.eq.s32.totalorder %s877_s22, 1  ;;  %s825_s8 = smov [#allocation8]  }
 0x186   : > { %s473_s30 = sshll.u32 %s825_s8, 4  ;;  %s474_s30 = int_to_ptr.vmem [resolvable:$true] %s473_s30 }
 0x187   : > { %s747_s6 = scalar_lea.vmem %s474_s30, 128  ;;  %p754_p12 = scmp.lt.s32.totalorder %s474_s30, %s474_s30 }
 0x188   : > { %p748_p6 = scmp.ne.s32.totalorder %s474_s30, %s747_s6  ;;  %p755_p2 = scmp.lt.s32.totalorder %s747_s6, %s747_s6 }
 0x18a   : > { %p749_p0 = pnand %p748_p6, %p633_p3  ;;  %p756_p4 = por %p755_p2, %p754_p12 }
 0x18c   : > { %p750_p1 = pneg %p749_p0 }
 0x18e   : > { %p757_p5 = pnand %p756_p4, %p750_p1 }
 0x190   : > { %760 = shalt.err (!%p757_p5)
}
 0x191   : > { %s761_s16 = scalar_lea.hbm %s1064_s5, 128 }
 0x192   : > { %p762_p9 = scmp.ne.s32.totalorder %s1064_s5, %s761_s16  ;;  %p767_p7 = scmp.lt.u32.totalorder %s761_s16, %s1064_s5 }
 0x194   : > { %p763_p11 = pnand %p762_p9, %p633_p3 }
 0x196   : > { %p764_p13 = pneg %p763_p11 }
 0x198   : > { %p769_p8 = pnand %p767_p7, %p764_p13 }
 0x19a   : > { %772 = shalt.err (!%p769_p8)
}
 0x19b   : > { %s826_s12 = smov 64   ;;  %s827_s28 = smov 4  }
 0x19c   : > { %622 = dma.vmem_to_hbm [thread:$0]  (%p633_p3), %s474_s30, 128, %s1064_s5, [#allocation5], %s826_s12, %s826_s12, %s827_s28  }
 0x19d   : > { %798 = dma.done.wait (%p633_p3), [#allocation5], 128  }
 0x19e   : > { %800 = vsyncadd (%p633_p3), [#allocation5], 4294967168 }
 0x19f PF: > { %p19_p10 = scmp.ge.s32.totalorder %s880_s23, 4   ;;  %s1070_s18 = smov %s807_s19 }
 0x1a0   : > { %s1071_s19 = smov %s811_s20  ;;  %s1072_s20 = smov %s890_s26 }
 0x1a1   : > { %s1073_s21 = smov %s880_s23  ;;  %21 = sbr.rel (!%p19_p10) target bundleno = 6 (0x6), region = 98 }
 0x1a8   :  { %489 = vsyncpa [#allocation4], 1 }
 0x1a9   :  { %491 = vsyncpa [#allocation4 + $0x1], 1 }
 0x1aa   :  { %492 = vsyncpa [#allocation7], 1 }
 0x1ab   :  { %494 = vsyncpa [#allocation7 + $0x1], 1 }
 0x1ac   :  { %495 = vsyncpa [#allocation5], 1 }
 0x1ad   :  { %497 = vsyncpa [#allocation5 + $0x1], 1 }

</bundles_post_ra>
